<compile_context>
chip_gen: v6e
topology: v6e:2x2x1
jax: 0.10.0
libtpu: 0.0.40
codegen_flags: <defaults>
</compile_context>

<pallas_src>
import jax
import jax.numpy as jnp
from jax.experimental import pallas as pl
from jax.experimental.pallas import tpu as pltpu


def _linear_kernel(x_ref, w_ref, b_ref, o_ref):
    # y = x @ W_t + b   (W_t is [in, out], plain [M,K]x[K,N] on the MXU)
    y = jnp.dot(x_ref[...], w_ref[...], preferred_element_type=jnp.float32)
    o_ref[...] = (y + b_ref[...]).astype(o_ref.dtype)


def _linear_state_kernel(x_ref, w_ref, b_ref, s_ref, o_ref):
    # y = (x @ W_t + b) * state, epilogue in f32 before the final cast.
    y = jnp.dot(x_ref[...], w_ref[...], preferred_element_type=jnp.float32)
    y = y + b_ref[...]
    o_ref[...] = (y * s_ref[...].astype(jnp.float32)).astype(o_ref.dtype)


def _plain_forward(x, weight, bias, state=None):
    # Small-batch fast path: let XLA fuse it; Pallas launch overhead dominates
    # at tiny B.
    y = x @ weight.T + bias
    return y * state if state is not None else y


def simple_encoder_forward(x, weight, bias, state=None, *,
                           block_b=4096, use_pallas=None):
    """Pallas implementation of SimpleEncoder.forward.

    x:      [B, 10] float32
    weight: [5, 10] float32 (native PyTorch nn.Linear layout: [out, in])
    bias:   [5]     float32
    state:  optional [B, 5] float32
    returns [B, 5]  float32

    use_pallas: None -> auto-dispatch (plain jnp below ~2048 rows),
                True/False -> force.
    """
    B, in_f = x.shape
    out_f = weight.shape[0]

    if use_pallas is None:
        use_pallas = B >= 2048
    if not use_pallas:
        return _plain_forward(x, weight, bias, state)

    # Tile the batch. Small B -> single full-batch block (block == full dim
    # satisfies the (8,128) rule). Large B -> fixed multiple-of-8 tile; the
    # ragged last block is handled by Pallas (no wrapper pad / output slice).
    tb = B if B <= block_b else block_b
    grid = (pl.cdiv(B, tb),)

    # One-time tiny layout fixes in the wrapper (negligible cost).
    weight_t = weight.T                 # [in_f, out_f]: plain MxK @ KxN dot
    bias2 = bias.reshape(1, out_f)      # rank-2 broadcast in the epilogue

    out_shape = jax.ShapeDtypeStruct((B, out_f), x.dtype)

    x_spec = pl.BlockSpec((tb, in_f), lambda i: (i, 0))
    w_spec = pl.BlockSpec((in_f, out_f), lambda i: (0, 0))   # VMEM-resident
    b_spec = pl.BlockSpec((1, out_f), lambda i: (0, 0))      # VMEM-resident
    o_spec = pl.BlockSpec((tb, out_f), lambda i: (i, 0))

    compiler_params = pltpu.CompilerParams(
        dimension_semantics=("parallel",),   # 2 TCs on v7x; no-op on v5e/v6e
        vmem_limit_bytes=32 * 1024 * 1024,   # covers double-buffered tiles on v5e too
    )

    if state is None:
        return pl.pallas_call(
            _linear_kernel,
            out_shape=out_shape,
            grid=grid,
            in_specs=[x_spec, w_spec, b_spec],
            out_specs=o_spec,
            compiler_params=compiler_params,
        )(x, weight_t, bias2)
    else:
        s_spec = pl.BlockSpec((tb, out_f), lambda i: (i, 0))
        return pl.pallas_call(
            _linear_state_kernel,
            out_shape=out_shape,
            grid=grid,
            in_specs=[x_spec, w_spec, b_spec, s_spec],
            out_specs=o_spec,
            compiler_params=compiler_params,
        )(x, weight_t, bias2, state)


def _init_linear_params(key, in_f=10, out_f=5):
    # Deterministic init mimicking torch.nn.Linear default:
    # U(-1/sqrt(in_f), 1/sqrt(in_f)) for both weight and bias.
    kw, kb = jax.random.split(key)
    bound = 1.0 / jnp.sqrt(jnp.float32(in_f))
    weight = jax.random.uniform(kw, (out_f, in_f), jnp.float32, -bound, bound)
    bias = jax.random.uniform(kb, (out_f,), jnp.float32, -bound, bound)
    return weight, bias


if __name__ == "__main__":
    key = jax.random.PRNGKey(0)
    k_x, k_s, k_p = jax.random.split(key, 3)

    B, IN_F, OUT_F = 8, 10, 5
    x = jax.random.normal(k_x, (B, IN_F), jnp.float32)
    state = jax.random.normal(k_s, (B, OUT_F), jnp.float32)
    weight, bias = _init_linear_params(k_p, IN_F, OUT_F)

    # Force the Pallas path so the kernel is exercised even at tiny B.
    y0 = simple_encoder_forward(x, weight, bias, state=None, use_pallas=True)
    y1 = simple_encoder_forward(x, weight, bias, state=state, use_pallas=True)
    jax.block_until_ready((y0, y1))

    ref0 = x @ weight.T + bias
    ref1 = ref0 * state
    assert jnp.allclose(y0, ref0, atol=1e-5, rtol=1e-5)
    assert jnp.allclose(y1, ref1, atol=1e-5, rtol=1e-5)

    # Exercise the multi-tile + ragged-last-block path (no wrapper pad/slice).
    B2 = 100
    k_x2, k_s2 = jax.random.split(k_x)
    x2 = jax.random.normal(k_x2, (B2, IN_F), jnp.float32)
    s2 = jax.random.normal(k_s2, (B2, OUT_F), jnp.float32)
    y2 = simple_encoder_forward(x2, weight, bias, state=s2,
                                block_b=64, use_pallas=True)
    jax.block_until_ready(y2)
    ref2 = (x2 @ weight.T + bias) * s2
    assert jnp.allclose(y2, ref2, atol=1e-5, rtol=1e-5)

    # Auto-dispatch small-B fast path (plain jnp) still matches.
    y3 = simple_encoder_forward(x, weight, bias, state=state)  # use_pallas=None
    jax.block_until_ready(y3)
    assert jnp.allclose(y3, ref1, atol=1e-5, rtol=1e-5)

    print("KERNEL_OK")
</pallas_src>

<mosaic_0001>
module attributes {stable_mosaic.version = 11 : i64} {
  func.func @_linear_kernel(%arg0: i32, %arg1: memref<8x10xf32, #tpu.memory_space<vmem>>, %arg2: memref<10x5xf32, #tpu.memory_space<vmem>>, %arg3: memref<1x5xf32, #tpu.memory_space<vmem>>, %arg4: memref<8x5xf32, #tpu.memory_space<vmem>>) attributes {dimension_semantics = [#tpu.dimension_semantics<parallel>], iteration_bounds = array<i64: 1>, scalar_prefetch = 0 : i64, scratch_operands = 0 : i64, tpu.core_type = #tpu.core_type<tc>, window_params = [{transform_indices = @transform_0, window_bounds = array<i64: 8, 10>}, {pipeline_mode = #tpu.pipeline_mode<synchronous>, transform_indices = @transform_1, window_bounds = array<i64: 10, 5>}, {pipeline_mode = #tpu.pipeline_mode<synchronous>, transform_indices = @transform_2, window_bounds = array<i64: 1, 5>}, {transform_indices = @transform_3, window_bounds = array<i64: 8, 5>}]} {
    %c0 = arith.constant 0 : index
    %c0_0 = arith.constant 0 : index
    %0 = vector.load %arg1[%c0, %c0_0] : memref<8x10xf32, #tpu.memory_space<vmem>>, vector<8x10xf32>
    %c0_1 = arith.constant 0 : index
    %c0_2 = arith.constant 0 : index
    %1 = vector.load %arg2[%c0_1, %c0_2] : memref<10x5xf32, #tpu.memory_space<vmem>>, vector<10x5xf32>
    %cst = arith.constant dense<0.000000e+00> : vector<8x5xf32>
    %2 = tpu.matmul %0, %1, %cst {dimension_numbers = #tpu.dot_dimension_numbers<[1], [0], [0], [1], [0, 0, 1, 1], [], []>} : vector<8x10xf32>, vector<10x5xf32>, vector<8x5xf32> -> vector<8x5xf32>
    %c0_3 = arith.constant 0 : index
    %c0_4 = arith.constant 0 : index
    %3 = vector.load %arg3[%c0_3, %c0_4] : memref<1x5xf32, #tpu.memory_space<vmem>>, vector<1x5xf32>
    %4 = vector.broadcast %3 : vector<1x5xf32> to vector<8x5xf32>
    %5 = arith.addf %2, %4 : vector<8x5xf32>
    %c0_5 = arith.constant 0 : index
    %c0_6 = arith.constant 0 : index
    %6 = vector.load %arg4[%c0_5, %c0_6] : memref<8x5xf32, #tpu.memory_space<vmem>>, vector<8x5xf32>
    tpu.vector_store %arg4[%c0_5, %c0_6], %5 {strides = array<i32>} : memref<8x5xf32, #tpu.memory_space<vmem>>, vector<8x5xf32>,
    return
  }
  func.func @transform_0(%arg0: i32) -> (i32, i32) {
    %c0_i32 = arith.constant 0 : i32
    %c0_i32_0 = arith.constant 0 : i32
    return %arg0, %c0_i32 : i32, i32
  }
  func.func @transform_1(%arg0: i32) -> (i32, i32) {
    %c0_i32 = arith.constant 0 : i32
    %c0_i32_0 = arith.constant 0 : i32
    %c0_i32_1 = arith.constant 0 : i32
    return %c0_i32, %c0_i32_0 : i32, i32
  }
  func.func @transform_2(%arg0: i32) -> (i32, i32) {
    %c0_i32 = arith.constant 0 : i32
    %c0_i32_0 = arith.constant 0 : i32
    %c0_i32_1 = arith.constant 0 : i32
    return %c0_i32, %c0_i32_0 : i32, i32
  }
  func.func @transform_3(%arg0: i32) -> (i32, i32) {
    %c0_i32 = arith.constant 0 : i32
    %c0_i32_0 = arith.constant 0 : i32
    return %arg0, %c0_i32 : i32, i32
  }
}

</mosaic_0001>

<bundles_post_ra>
// kernel: tpu_custom_call.1
= control target key start
LH: loop header
LB: loop body
LE: loop exit
PB: predicated region body
PF: predicated region fallthrough
CT: control target
= control target key end

     0   :  { %vm29_vm0 = vcmask 1041408   ;;  %v157_v1 = vmov 0.0   ;;  %vm158_vm1 = vmmov 0   ;;  %s195_s0 = inlined_call_operand.vmem [shape: f32[8,10], index: 0, kind: input, shape index: {}]   ;;  %s196_s1 = inlined_call_operand.vmem [shape: f32[10,5], index: 1, kind: input, shape index: {}]   ;;  %s197_s2 = inlined_call_operand.vmem [shape: f32[1,5], index: 2, kind: input, shape index: {}]   ;;  %s198_s3 = inlined_call_operand.hbm [shape: f32[8,5], index: 3, kind: output, shape index: {}]  }
   0x1   :  { %v17_v0 = vld [vmem:[%s196_s1 + $0x8] sm:$0x3]  ;;  %125 = vmatprep.subr.mxu0 %v157_v1  ;;  %v16_v2 = vld [vmem:[%s196_s1] sm:$0xff]  ;;  %129 = vmatprep.mubr.msk.f32.mxu0 %vm158_vm1, %v157_v1 }
   0x2   :  { %8 = vsyncpa [#allocation3], 0  ;;  %126 = vmatpush3.msk.msra.mxu0 %vm29_vm0, %v17_v0  ;;  %v15_v3 = vld [vmem:[%s195_s0] sm:$0xff]  ;;  %vm25_vm2 = vcmask 80896   ;;  %s159_s20 = smov [#allocation2]   ;;  %vm103_vm3 = vcmask 39936  }
   0x3   :  { %127 = vmatprep.subr.mxu0 %v157_v1  ;;  %v119_v4 = vld [vmem:[%s197_s2] ss:$0 sm:$0xff]  ;;  %s111_s21 = sshll.u32 %s159_s20, 4  ;;  %s112_s21 = int_to_ptr.vmem [resolvable:$true] %s111_s21 }
   0x4   :  { %128 = vmatpush3.msra.mxu0 %v16_v2  ;;  %s135_s1 = scalar_lea.vmem %s112_s21, 128  ;;  %p140_p1 = scmp.lt.s32.totalorder %s112_s21, %s112_s21 }
   0x5   :  { %130 = vmatmul.mubr.msk.f32.vlgmr.msra.gmra.mxu0 %vm25_vm2, %v15_v3  ;;  %p136_p0 = scmp.ne.s32.totalorder %s112_s21, %s135_s1  ;;  %p141_p2 = scmp.lt.s32.totalorder %s135_s1, %s135_s1 }
   0x7   :  { %p142_p3 = por %p141_p2, %p140_p1 }
   0x9   :  { %p143_p4 = pnand %p142_p3, %p136_p0 }
  0xc5   :  { %v99_v5 = vpop.f32.mrf.mxu0 }
  0xc6   :  { %v100_v6 = vadd.f32 %v119_v4, %v99_v5 }
  0xc7   :  { %v131_v7 = vpop.f32.mrf.mxu0 }
  0xc8   :  { %104 = vst.msk [vmem:[#allocation2] sm:$0xff] %vm103_vm3, %v100_v6 }
  0xc9   :  { %146 = shalt.err (!%p143_p4)
}
  0xca   :  { %114 = dma.vmem_to_hbm [thread:$0]  %s112_s21, 128, %s198_s3, [#allocation3]  }
  0xcb   :  { %155 = dma.done.wait [#allocation3], 128  }
  0xcc   :  { %156 = vsyncadd [#allocation3], 4294967168 }
  0xcd   :  { %118 = vsyncpa [#allocation3], 1 }

</bundles_post_ra>
